<compile_context>
chip_gen: v7x
topology: tpu7x:2x2x1
jax: 0.10.0
libtpu: 0.0.40
codegen_flags: <defaults>
</compile_context>

<pallas_src>
import jax
import jax.numpy as jnp
from jax.experimental import pallas as pl
from jax.experimental.pallas import tpu as pltpu


_CHUNK = 128  # rows per in-kernel sub-tile (bounds live vregs; multiple of 8 & 128)


def _round_up(n, m):
    return ((n + m - 1) // m) * m


def ann_kernel(x_ref,
               w_in_ref, b_in_ref,
               w1_ref, b1_ref,
               w2_ref, b2_ref,
               w_out_ref, b_out_ref,
               o_ref):
    f32 = jnp.float32
    bf16 = jnp.bfloat16
    tb = x_ref.shape[0]

    # Weights / biases are tiny; load once per grid step and hoist broadcasts
    # out of the unrolled chunk loop.
    w_in = w_in_ref[...]                                   # (13, 32) bf16
    w1 = w1_ref[...]                                       # (32, 32) bf16
    w2 = w2_ref[...]                                       # (32, 32) bf16
    w_out = w_out_ref[...]                                 # (8, 32)  bf16 (row-replicated)
    b_in = jnp.broadcast_to(b_in_ref[...], (_CHUNK, 32))   # f32
    b1 = jnp.broadcast_to(b1_ref[...], (_CHUNK, 32))       # f32
    b2 = jnp.broadcast_to(b2_ref[...], (_CHUNK, 32))       # f32
    b_out = jnp.broadcast_to(b_out_ref[...], (1, _CHUNK))  # f32

    # Static (fully unrolled) loop over 128-row sub-chunks of the block.
    for c in range(tb // _CHUNK):
        lo = c * _CHUNK
        xs = x_ref[lo:lo + _CHUNK, :]                      # (CHUNK, 13) bf16

        # input layer + ReLU  (bf16 MXU inputs, f32 accumulation & elementwise)
        h = jnp.dot(xs, w_in, preferred_element_type=f32)
        h = jnp.maximum(h + b_in, 0.0)                     # (CHUNK, 32) f32

        # fc1 + ReLU
        h = jnp.dot(h.astype(bf16), w1, preferred_element_type=f32)
        h = jnp.maximum(h + b1, 0.0)

        # fc2 + ReLU
        h = jnp.dot(h.astype(bf16), w2, preferred_element_type=f32)
        h = jnp.maximum(h + b2, 0.0)

        # Output layer, lane-dense: contract the hidden dim of both operands so
        # the batch dimension lands on lanes -> (8, CHUNK); row 0 is the result.
        y8 = jax.lax.dot_general(
            w_out, h.astype(bf16),
            dimension_numbers=(((1,), (1,)), ((), ())),
            preferred_element_type=f32)                    # (8, CHUNK) f32
        o_ref[:, lo:lo + _CHUNK] = y8[0:1, :] + b_out      # (1, CHUNK) f32


def ann_forward(x, params, *, block_rows=1024, stream_dtype=jnp.bfloat16):
    """x: (B, 13) float32. params: dict of PyTorch-convention weights/biases.

    Streams x / weights as `stream_dtype` (bf16 by default) to halve HBM read
    traffic; all accumulation and elementwise math is f32.
    """
    B, F = x.shape
    assert F == 13, F

    # Batch tile: multiple of 128 (lane-dense output blocks + chunking), capped
    # at block_rows. Pad the batch up to a whole number of tiles.
    TB = min(_round_up(block_rows, _CHUNK), _round_up(B, _CHUNK))
    B_pad = _round_up(B, TB)
    num_blocks = B_pad // TB

    x_p = x.astype(stream_dtype)
    if B_pad != B:
        x_p = jnp.pad(x_p, ((0, B_pad - B), (0, 0)))

    # PyTorch Linear stores weight as (out, in); transpose hidden layers to
    # (in, out) for x @ W.  The output-layer weight stays in (out, in)=(1, 32)
    # orientation (replicated to 8 rows) for the lane-dense final matmul.
    f32 = jnp.float32
    w_in = params["input.weight"].T.astype(stream_dtype)        # (13, 32)
    b_in = params["input.bias"].astype(f32)[None, :]            # (1, 32)
    w1 = params["fc1.weight"].T.astype(stream_dtype)            # (32, 32)
    b1 = params["fc1.bias"].astype(f32)[None, :]                # (1, 32)
    w2 = params["fc2.weight"].T.astype(stream_dtype)            # (32, 32)
    b2 = params["fc2.bias"].astype(f32)[None, :]                # (1, 32)
    w_out = jnp.broadcast_to(
        params["output.weight"].astype(stream_dtype), (8, 32))  # (8, 32)
    b_out = params["output.bias"].astype(f32).reshape(1, 1)     # (1, 1)

    in_specs = [
        pl.BlockSpec((TB, 13), lambda i: (i, 0)),   # x: streamed per block
        pl.BlockSpec((13, 32), lambda i: (0, 0)),   # w_in: VMEM-resident
        pl.BlockSpec((1, 32), lambda i: (0, 0)),    # b_in
        pl.BlockSpec((32, 32), lambda i: (0, 0)),   # w1
        pl.BlockSpec((1, 32), lambda i: (0, 0)),    # b1
        pl.BlockSpec((32, 32), lambda i: (0, 0)),   # w2
        pl.BlockSpec((1, 32), lambda i: (0, 0)),    # b2
        pl.BlockSpec((8, 32), lambda i: (0, 0)),    # w_out (row-replicated)
        pl.BlockSpec((1, 1), lambda i: (0, 0)),     # b_out
    ]

    out = pl.pallas_call(
        ann_kernel,
        out_shape=jax.ShapeDtypeStruct((1, B_pad), jnp.float32),
        grid=(num_blocks,),
        in_specs=in_specs,
        out_specs=pl.BlockSpec((1, TB), lambda i: (0, i)),   # lane-dense output
        compiler_params=pltpu.CompilerParams(
            dimension_semantics=("parallel",)),
    )(x_p, w_in, b_in, w1, b1, w2, b2, w_out, b_out)

    return out.reshape(B_pad)[:B].reshape(B, 1)


def init_params(key):
    """Deterministic parameter init matching the nn.Linear shapes of ANN."""
    shapes = {
        "input.weight": (32, 13), "input.bias": (32,),
        "fc1.weight": (32, 32), "fc1.bias": (32,),
        "fc2.weight": (32, 32), "fc2.bias": (32,),
        "output.weight": (1, 32), "output.bias": (1,),
    }
    params = {}
    for name, shape in sorted(shapes.items()):
        key, sub = jax.random.split(key)
        fan_in = shape[-1] if len(shape) == 2 else shape[0]
        bound = 1.0 / jnp.sqrt(jnp.float32(fan_in))
        params[name] = jax.random.uniform(
            sub, shape, jnp.float32, minval=-bound, maxval=bound)
    return params


def reference_forward(x, params, stream_dtype=jnp.bfloat16):
    """Pure-JAX reference mirroring the kernel numerics exactly:
    bf16 streamed inputs/weights into the MXU, f32 accumulation, f32 bias/ReLU.
    (With stream_dtype=jnp.float32 this is the plain PyTorch-equivalent f32 path.)
    """
    f32 = jnp.float32
    sd = stream_dtype
    h = jnp.dot(x.astype(sd), params["input.weight"].T.astype(sd),
                preferred_element_type=f32) + params["input.bias"]
    h = jnp.maximum(h, 0.0)
    h = jnp.dot(h.astype(sd), params["fc1.weight"].T.astype(sd),
                preferred_element_type=f32) + params["fc1.bias"]
    h = jnp.maximum(h, 0.0)
    h = jnp.dot(h.astype(sd), params["fc2.weight"].T.astype(sd),
                preferred_element_type=f32) + params["fc2.bias"]
    h = jnp.maximum(h, 0.0)
    return jnp.dot(h.astype(sd), params["output.weight"].T.astype(sd),
                   preferred_element_type=f32) + params["output.bias"]


if __name__ == "__main__":
    key = jax.random.PRNGKey(0)
    key, pkey, xkey = jax.random.split(key, 3)

    params = init_params(pkey)
    # Batch not a multiple of the tile -> exercises padding; block_rows=256
    # gives a 4-step grid so tiling / parallel semantics are exercised too.
    B = 1000
    x = jax.random.normal(xkey, (B, 13), jnp.float32)

    out = ann_forward(x, params, block_rows=256)
    out = jax.block_until_ready(out)

    ref = reference_forward(x, params)
    assert out.shape == (B, 1), out.shape
    max_err = float(jnp.max(jnp.abs(out - ref)))
    assert jnp.allclose(out, ref, atol=1e-3, rtol=1e-3), max_err

    print("KERNEL_OK")
</pallas_src>

<mosaic_0001>
module attributes {stable_mosaic.version = 11 : i64} {
  func.func @ann_kernel(%arg0: i32, %arg1: memref<256x13xbf16, #tpu.memory_space<vmem>>, %arg2: memref<13x32xbf16, #tpu.memory_space<vmem>>, %arg3: memref<1x32xf32, #tpu.memory_space<vmem>>, %arg4: memref<32x32xbf16, #tpu.memory_space<vmem>>, %arg5: memref<1x32xf32, #tpu.memory_space<vmem>>, %arg6: memref<32x32xbf16, #tpu.memory_space<vmem>>, %arg7: memref<1x32xf32, #tpu.memory_space<vmem>>, %arg8: memref<8x32xbf16, #tpu.memory_space<vmem>>, %arg9: memref<1x1xf32, #tpu.memory_space<vmem>>, %arg10: memref<1x256xf32, #tpu.memory_space<vmem>>) attributes {dimension_semantics = [#tpu.dimension_semantics<parallel>], iteration_bounds = array<i64: 4>, scalar_prefetch = 0 : i64, scratch_operands = 0 : i64, tpu.core_type = #tpu.core_type<tc>, window_params = [{transform_indices = @transform_0, window_bounds = array<i64: 256, 13>}, {pipeline_mode = #tpu.pipeline_mode<synchronous>, transform_indices = @transform_1, window_bounds = array<i64: 13, 32>}, {pipeline_mode = #tpu.pipeline_mode<synchronous>, transform_indices = @transform_2, window_bounds = array<i64: 1, 32>}, {pipeline_mode = #tpu.pipeline_mode<synchronous>, transform_indices = @transform_3, window_bounds = array<i64: 32, 32>}, {pipeline_mode = #tpu.pipeline_mode<synchronous>, transform_indices = @transform_4, window_bounds = array<i64: 1, 32>}, {pipeline_mode = #tpu.pipeline_mode<synchronous>, transform_indices = @transform_5, window_bounds = array<i64: 32, 32>}, {pipeline_mode = #tpu.pipeline_mode<synchronous>, transform_indices = @transform_6, window_bounds = array<i64: 1, 32>}, {pipeline_mode = #tpu.pipeline_mode<synchronous>, transform_indices = @transform_7, window_bounds = array<i64: 8, 32>}, {pipeline_mode = #tpu.pipeline_mode<synchronous>, transform_indices = @transform_8, window_bounds = array<i64: 1, 1>}, {transform_indices = @transform_9, window_bounds = array<i64: 1, 256>}]} {
    %c0 = arith.constant 0 : index
    %c0_0 = arith.constant 0 : index
    %0 = vector.load %arg2[%c0, %c0_0] : memref<13x32xbf16, #tpu.memory_space<vmem>>, vector<13x32xbf16>
    %c0_1 = arith.constant 0 : index
    %c0_2 = arith.constant 0 : index
    %1 = vector.load %arg4[%c0_1, %c0_2] : memref<32x32xbf16, #tpu.memory_space<vmem>>, vector<32x32xbf16>
    %c0_3 = arith.constant 0 : index
    %c0_4 = arith.constant 0 : index
    %2 = vector.load %arg6[%c0_3, %c0_4] : memref<32x32xbf16, #tpu.memory_space<vmem>>, vector<32x32xbf16>
    %c0_5 = arith.constant 0 : index
    %c0_6 = arith.constant 0 : index
    %3 = vector.load %arg8[%c0_5, %c0_6] : memref<8x32xbf16, #tpu.memory_space<vmem>>, vector<8x32xbf16>
    %c0_7 = arith.constant 0 : index
    %c0_8 = arith.constant 0 : index
    %4 = vector.load %arg3[%c0_7, %c0_8] : memref<1x32xf32, #tpu.memory_space<vmem>>, vector<1x32xf32>
    %5 = vector.shape_cast %4 : vector<1x32xf32> to vector<1x32xf32>
    %6 = vector.broadcast %5 : vector<1x32xf32> to vector<128x32xf32>
    %c0_9 = arith.constant 0 : index
    %c0_10 = arith.constant 0 : index
    %7 = vector.load %arg5[%c0_9, %c0_10] : memref<1x32xf32, #tpu.memory_space<vmem>>, vector<1x32xf32>
    %8 = vector.shape_cast %7 : vector<1x32xf32> to vector<1x32xf32>
    %9 = vector.broadcast %8 : vector<1x32xf32> to vector<128x32xf32>
    %c0_11 = arith.constant 0 : index
    %c0_12 = arith.constant 0 : index
    %10 = vector.load %arg7[%c0_11, %c0_12] : memref<1x32xf32, #tpu.memory_space<vmem>>, vector<1x32xf32>
    %11 = vector.shape_cast %10 : vector<1x32xf32> to vector<1x32xf32>
    %12 = vector.broadcast %11 : vector<1x32xf32> to vector<128x32xf32>
    %c0_13 = arith.constant 0 : index
    %c0_14 = arith.constant 0 : index
    %13 = vector.load %arg9[%c0_13, %c0_14] : memref<1x1xf32, #tpu.memory_space<vmem>>, vector<1x1xf32>
    %14 = vector.shape_cast %13 : vector<1x1xf32> to vector<1x1xf32>
    %15 = vector.broadcast %14 : vector<1x1xf32> to vector<1x128xf32>
    %c0_15 = arith.constant 0 : index
    %c0_16 = arith.constant 0 : index
    %16 = vector.load %arg1[%c0_15, %c0_16] : memref<256x13xbf16, #tpu.memory_space<vmem>>, vector<128x13xbf16>
    %cst = arith.constant dense<0.000000e+00> : vector<128x32xf32>
    %17 = tpu.matmul %16, %0, %cst {dimension_numbers = #tpu.dot_dimension_numbers<[1], [0], [0], [1], [0, 0, 1, 1], [], []>} : vector<128x13xbf16>, vector<13x32xbf16>, vector<128x32xf32> -> vector<128x32xf32>
    %18 = arith.addf %17, %6 : vector<128x32xf32>
    %cst_17 = arith.constant 0.000000e+00 : f32
    %19 = vector.broadcast %cst_17 : f32 to vector<128x32xf32>
    %20 = arith.maximumf %18, %19 : vector<128x32xf32>
    %21 = arith.truncf %20 : vector<128x32xf32> to vector<128x32xbf16>
    %cst_18 = arith.constant dense<0.000000e+00> : vector<128x32xf32>
    %22 = tpu.matmul %21, %1, %cst_18 {dimension_numbers = #tpu.dot_dimension_numbers<[1], [0], [0], [1], [0, 0, 1, 1], [], []>} : vector<128x32xbf16>, vector<32x32xbf16>, vector<128x32xf32> -> vector<128x32xf32>
    %23 = arith.addf %22, %9 : vector<128x32xf32>
    %cst_19 = arith.constant 0.000000e+00 : f32
    %24 = vector.broadcast %cst_19 : f32 to vector<128x32xf32>
    %25 = arith.maximumf %23, %24 : vector<128x32xf32>
    %26 = arith.truncf %25 : vector<128x32xf32> to vector<128x32xbf16>
    %cst_20 = arith.constant dense<0.000000e+00> : vector<128x32xf32>
    %27 = tpu.matmul %26, %2, %cst_20 {dimension_numbers = #tpu.dot_dimension_numbers<[1], [0], [0], [1], [0, 0, 1, 1], [], []>} : vector<128x32xbf16>, vector<32x32xbf16>, vector<128x32xf32> -> vector<128x32xf32>
    %28 = arith.addf %27, %12 : vector<128x32xf32>
    %cst_21 = arith.constant 0.000000e+00 : f32
    %29 = vector.broadcast %cst_21 : f32 to vector<128x32xf32>
    %30 = arith.maximumf %28, %29 : vector<128x32xf32>
    %31 = arith.truncf %30 : vector<128x32xf32> to vector<128x32xbf16>
    %cst_22 = arith.constant dense<0.000000e+00> : vector<8x128xf32>
    %32 = tpu.matmul %3, %31, %cst_22 {dimension_numbers = #tpu.dot_dimension_numbers<[1], [1], [0], [0], [0, 0, 1, 0], [], []>} : vector<8x32xbf16>, vector<128x32xbf16>, vector<8x128xf32> -> vector<8x128xf32>
    %33 = vector.extract_strided_slice %32 {offsets = [0, 0], sizes = [1, 128], strides = [1, 1]} : vector<8x128xf32> to vector<1x128xf32>
    %34 = arith.addf %33, %15 : vector<1x128xf32>
    %c0_23 = arith.constant 0 : index
    %c0_24 = arith.constant 0 : index
    %35 = vector.load %arg10[%c0_23, %c0_24] : memref<1x256xf32, #tpu.memory_space<vmem>>, vector<1x128xf32>
    tpu.vector_store %arg10[%c0_23, %c0_24], %34 {strides = array<i32>} : memref<1x256xf32, #tpu.memory_space<vmem>>, vector<1x128xf32>,
    %c128 = arith.constant 128 : index
    %c0_25 = arith.constant 0 : index
    %36 = vector.load %arg1[%c128, %c0_25] : memref<256x13xbf16, #tpu.memory_space<vmem>>, vector<128x13xbf16>
    %cst_26 = arith.constant dense<0.000000e+00> : vector<128x32xf32>
    %37 = tpu.matmul %36, %0, %cst_26 {dimension_numbers = #tpu.dot_dimension_numbers<[1], [0], [0], [1], [0, 0, 1, 1], [], []>} : vector<128x13xbf16>, vector<13x32xbf16>, vector<128x32xf32> -> vector<128x32xf32>
    %38 = arith.addf %37, %6 : vector<128x32xf32>
    %cst_27 = arith.constant 0.000000e+00 : f32
    %39 = vector.broadcast %cst_27 : f32 to vector<128x32xf32>
    %40 = arith.maximumf %38, %39 : vector<128x32xf32>
    %41 = arith.truncf %40 : vector<128x32xf32> to vector<128x32xbf16>
    %cst_28 = arith.constant dense<0.000000e+00> : vector<128x32xf32>
    %42 = tpu.matmul %41, %1, %cst_28 {dimension_numbers = #tpu.dot_dimension_numbers<[1], [0], [0], [1], [0, 0, 1, 1], [], []>} : vector<128x32xbf16>, vector<32x32xbf16>, vector<128x32xf32> -> vector<128x32xf32>
    %43 = arith.addf %42, %9 : vector<128x32xf32>
    %cst_29 = arith.constant 0.000000e+00 : f32
    %44 = vector.broadcast %cst_29 : f32 to vector<128x32xf32>
    %45 = arith.maximumf %43, %44 : vector<128x32xf32>
    %46 = arith.truncf %45 : vector<128x32xf32> to vector<128x32xbf16>
    %cst_30 = arith.constant dense<0.000000e+00> : vector<128x32xf32>
    %47 = tpu.matmul %46, %2, %cst_30 {dimension_numbers = #tpu.dot_dimension_numbers<[1], [0], [0], [1], [0, 0, 1, 1], [], []>} : vector<128x32xbf16>, vector<32x32xbf16>, vector<128x32xf32> -> vector<128x32xf32>
    %48 = arith.addf %47, %12 : vector<128x32xf32>
    %cst_31 = arith.constant 0.000000e+00 : f32
    %49 = vector.broadcast %cst_31 : f32 to vector<128x32xf32>
    %50 = arith.maximumf %48, %49 : vector<128x32xf32>
    %51 = arith.truncf %50 : vector<128x32xf32> to vector<128x32xbf16>
    %cst_32 = arith.constant dense<0.000000e+00> : vector<8x128xf32>
    %52 = tpu.matmul %3, %51, %cst_32 {dimension_numbers = #tpu.dot_dimension_numbers<[1], [1], [0], [0], [0, 0, 1, 0], [], []>} : vector<8x32xbf16>, vector<128x32xbf16>, vector<8x128xf32> -> vector<8x128xf32>
    %53 = vector.extract_strided_slice %52 {offsets = [0, 0], sizes = [1, 128], strides = [1, 1]} : vector<8x128xf32> to vector<1x128xf32>
    %54 = arith.addf %53, %15 : vector<1x128xf32>
    %c0_33 = arith.constant 0 : index
    %c128_34 = arith.constant 128 : index
    %55 = vector.load %arg10[%c0_33, %c128_34] : memref<1x256xf32, #tpu.memory_space<vmem>>, vector<1x128xf32>
    tpu.vector_store %arg10[%c0_33, %c128_34], %54 {strides = array<i32>} : memref<1x256xf32, #tpu.memory_space<vmem>>, vector<1x128xf32>,
    return
  }
  func.func @transform_0(%arg0: i32) -> (i32, i32) {
    %c0_i32 = arith.constant 0 : i32
    %c0_i32_0 = arith.constant 0 : i32
    return %arg0, %c0_i32 : i32, i32
  }
  func.func @transform_1(%arg0: i32) -> (i32, i32) {
    %c0_i32 = arith.constant 0 : i32
    %c0_i32_0 = arith.constant 0 : i32
    %c0_i32_1 = arith.constant 0 : i32
    return %c0_i32, %c0_i32_0 : i32, i32
  }
  func.func @transform_2(%arg0: i32) -> (i32, i32) {
    %c0_i32 = arith.constant 0 : i32
    %c0_i32_0 = arith.constant 0 : i32
    %c0_i32_1 = arith.constant 0 : i32
    return %c0_i32, %c0_i32_0 : i32, i32
  }
  func.func @transform_3(%arg0: i32) -> (i32, i32) {
    %c0_i32 = arith.constant 0 : i32
    %c0_i32_0 = arith.constant 0 : i32
    %c0_i32_1 = arith.constant 0 : i32
    return %c0_i32, %c0_i32_0 : i32, i32
  }
  func.func @transform_4(%arg0: i32) -> (i32, i32) {
    %c0_i32 = arith.constant 0 : i32
    %c0_i32_0 = arith.constant 0 : i32
    %c0_i32_1 = arith.constant 0 : i32
    return %c0_i32, %c0_i32_0 : i32, i32
  }
  func.func @transform_5(%arg0: i32) -> (i32, i32) {
    %c0_i32 = arith.constant 0 : i32
    %c0_i32_0 = arith.constant 0 : i32
    %c0_i32_1 = arith.constant 0 : i32
    return %c0_i32, %c0_i32_0 : i32, i32
  }
  func.func @transform_6(%arg0: i32) -> (i32, i32) {
    %c0_i32 = arith.constant 0 : i32
    %c0_i32_0 = arith.constant 0 : i32
    %c0_i32_1 = arith.constant 0 : i32
    return %c0_i32, %c0_i32_0 : i32, i32
  }
  func.func @transform_7(%arg0: i32) -> (i32, i32) {
    %c0_i32 = arith.constant 0 : i32
    %c0_i32_0 = arith.constant 0 : i32
    %c0_i32_1 = arith.constant 0 : i32
    return %c0_i32, %c0_i32_0 : i32, i32
  }
  func.func @transform_8(%arg0: i32) -> (i32, i32) {
    %c0_i32 = arith.constant 0 : i32
    %c0_i32_0 = arith.constant 0 : i32
    %c0_i32_1 = arith.constant 0 : i32
    return %c0_i32, %c0_i32_0 : i32, i32
  }
  func.func @transform_9(%arg0: i32) -> (i32, i32) {
    %c0_i32 = arith.constant 0 : i32
    %c0_i32_0 = arith.constant 0 : i32
    return %c0_i32, %arg0 : i32, i32
  }
}

</mosaic_0001>

<bundles_post_ra>
// kernel: tpu_custom_call.1
= control target key start
LH: loop header
LB: loop body
LE: loop exit
PB: predicated region body
PF: predicated region fallthrough
CT: control target
= control target key end

     0   :  { %s2511_s0 = inlined_call_operand.vmem [shape: bf16[1024,13], index: 0, kind: input, shape index: {}]   ;;  %s2512_s1 = inlined_call_operand.vmem [shape: bf16[13,32], index: 1, kind: input, shape index: {}]   ;;  %s2513_s2 = inlined_call_operand.vmem [shape: f32[1,32], index: 2, kind: input, shape index: {}]   ;;  %s2514_s3 = inlined_call_operand.vmem [shape: bf16[32,32], index: 3, kind: input, shape index: {}]   ;;  %s2515_s4 = inlined_call_operand.vmem [shape: f32[1,32], index: 4, kind: input, shape index: {}]   ;;  %s2516_s5 = inlined_call_operand.vmem [shape: bf16[32,32], index: 5, kind: input, shape index: {}]   ;;  %s2517_s6 = inlined_call_operand.vmem [shape: f32[1,32], index: 6, kind: input, shape index: {}]   ;;  %s2518_s7 = inlined_call_operand.vmem [shape: bf16[8,32], index: 7, kind: input, shape index: {}]   ;;  %s2519_s8 = inlined_call_operand.<no memory space> [shape: f32[1,1], index: 8, kind: input, shape index: {}]   ;;  %s2520_s9 = inlined_call_operand.hbm [shape: f32[1,1024], index: 9, kind: output, shape index: {}]  }
   0x1   :  { %v14_v0 = vstv %s2519_s8 }
   0x2   :  { %15 = vst [vmem:[#allocation2] sm:$0x1] %v14_v0 }
   0x3   :  { %16 = vsyncpa [#allocation4], 0 }
   0x4   :  { %18 = vsyncpa [#allocation4 + $0x1], 0  ;;  %s2118_s11 = smov 0   ;;  %s2120_s12 = smov 0  }
   0x5   :  { %s2122_s13 = smov 0   ;;  %s2124_s14 = smov 0  }
   0x6 LB: > { %s1611_s8 = sadd.s32 4294967295, %s2058_s14   ;;  %s1612_s15 = sadd.s32 4294967294, %s2058_s14   ;;  %s2058_s14 = sphi %s2124_s14, %s2528_s14   ;;  %s2054_s13 = sphi %s2122_s13, %s2527_s13   ;;  %s2050_s12 = sphi %s2120_s12, %s2526_s12   ;;  %s2046_s11 = sphi %s2118_s11, %s2525_s11  }
   0x7   : > { %s2141_s16 = sadd.s32 1, %s2058_s14   ;;  %s225_s17 = sadd.s32 1, %s2054_s13 }
   0x8   : > { %s222_s18 = ssub.s32 %s2058_s14, %s2141_s16  ;;  %p235_p0 = scmp.ne.s32.totalorder %s2054_s13, %s2050_s12 }
   0x9   : > { %p223_p1 = scmp.eq.s32.totalorder %s222_s18, 0  ;;  %p236_p2 = scmp.eq.s32.totalorder %s1611_s8, 3 }
   0xa   : > { %p241_p3 = scmp.ne.s32.totalorder %s2050_s12, %s2046_s11  ;;  %p242_p4 = scmp.eq.s32.totalorder %s1612_s15, 3 }
   0xb   : > { %s2151_s19 = scalar_select %p223_p1, %s2054_s13, %s225_s17  }
   0xc   : > { %p2153_p5 = por %p236_p2, %p235_p0  ;;  %p2157_p6 = por %p242_p4, %p241_p3 }
   0xd   : > { %p1615_p7 = scmp.ge.s32.totalorder %s2058_s14, 1  ;;  %p293_p8 = scmp.lt.s32.totalorder %s2058_s14, 5 }
   0xf   : > { %p294_p9 = pnand %p1615_p7, %p293_p8 }
  0x10   : > { %v1975_v1 = vld [vmem:[%s2512_s1] sm:$0x7f] (!%p294_p9)   ;;  %vm465_vm0 = vcmask (!%p294_p9), 1045504   ;;  %vm466_vm1 = vcmask (!%p294_p9), 1046528   ;;  %s2166_s24 = sshll.u32 (!%p294_p9), %s1611_s8, 5  ;;  %v2060_v2 = vmov (!%p294_p9), 65535  }
  0x11   : > { %297 = sbr.rel (%p294_p9) target bundleno = 1502 (0x5de), region = 56  ;;  %v467_v3 = vsel (!%p294_p9), %vm465_vm0, 4294967295, %v2060_v2  ;;  %p330_p10 = scmp.lt.s32.totalorder (!%p294_p9), %s2166_s24, 127  ;;  %vm440_vm2 = vcmask (!%p294_p9), 105472   ;;  %v2198_v14 = vld [vmem:[%s2514_s3] sm:$0xff] (!%p294_p9)   ;;  %v2205_v15 = vld [vmem:[%s2514_s3 + $0x8] sm:$0xff] (!%p294_p9)  }
  0x12   : > { %v468_v4 = vsel (!%p294_p9), %vm466_vm1, %v467_v3, 0  ;;  %1793 = vmatprep.subr.bf16.mxu1 (!%p294_p9), %v2198_v14  ;;  %v2212_v16 = vld [vmem:[%s2516_s5] sm:$0xff] (!%p294_p9)   ;;  %v2217_v17 = vld [vmem:[%s2516_s5 + $0x8] sm:$0xff] (!%p294_p9)   ;;  %vm605_vm3 = vcmask (!%p294_p9), 261120   ;;  %vm2062_vm4 = vmmov (!%p294_p9), 0   ;;  %s326_s15 = sand.u32 (!%p294_p9), 1, %s2050_s12  }
  0x13   : > { %v2169_v5 = vand.u32 (!%p294_p9), %v1975_v1, %v468_v4  ;;  %1794 = vmatpush3.bf16.msra.mxu1 (!%p294_p9), %v2198_v14  ;;  %v2227_v18 = vld [vmem:[%s2513_s2] ss:$0 sm:$0xff] (!%p294_p9)  ;;  %s1616_s17 = sshll.u32 (!%p294_p9), %s326_s15, 1  ;;  %s1539_s27 = scalar_lea.sflag (!%p294_p9), [#allocation4], %s326_s15 }
  0x14   : > { %1795 = vmatprep.subr.bf16.mxu1 (!%p294_p9), %v2205_v15  ;;  %s2396_s18 = scalar_lea.vmem (!%p294_p9), [#allocation3], %s1616_s17  ;;  %s2064_s30 = smov (!%p294_p9), [#allocation3]  }
  0x15   : > { %1775 = vmatprep.subr.bf16.mxu0 (!%p294_p9), %v2169_v5  ;;  %s1553_s22 = sshll.u32 (!%p294_p9), %s2396_s18, 4  ;;  %s2466_s22 = int_to_ptr.vmem [resolvable:$true] %s1553_s22 }
  0x16   : > { %1776 = vmatpush3.bf16.msra.mxu0 (!%p294_p9), %v2169_v5  ;;  %s1996_s28 = scalar_lea.vmem (!%p294_p9), %s2466_s22, 32 }
  0x17   : > { %1796 = vmatpush3.bf16.msra.mxu1 (!%p294_p9), %v2205_v15  ;;  %1813 = vmatprep.subr.bf16.mxu0 (!%p294_p9), %v2212_v16  ;;  %p1997_p11 = scmp.ne.s32.totalorder (!%p294_p9), %s2466_s22, %s1996_s28 }
  0x18   : > { %s331_s25 = scalar_select %p330_p10, %s2166_s24, 127 }
  0x19   : > { %p1998_p12 = pnand %p1997_p11, %p2153_p5 }
  0x1a   : > { %s1618_s26 = sshll.u32 %s331_s25, 2 }
  0x1b   : > { %s2177_s29 = scalar_lea.vmem %s2511_s0, %s1618_s26  ;;  %s2464_s26 = scalar_lea.hbm %s2520_s9, %s2166_s24 }
  0x1c   : > { %v1976_v6 = vld [vmem:[%s2177_s29] sm:$0xff]   ;;  %v1977_v7 = vld [vmem:[%s2177_s29 + $0x8] sm:$0xff]   ;;  %v1978_v8 = vld [vmem:[%s2177_s29 + $0x10] sm:$0xff]   ;;  %p1999_p13 = pneg %p1998_p12  ;;  %s2000_s24 = sshll.u32 %s2064_s30, 4  ;;  %s2001_s24 = int_to_ptr.vmem [resolvable:$false] %s2000_s24 }
  0x1d   : > { %1777 = vmatprep.mubr.msk.bf16.mxu0 %vm440_vm2, %v1976_v6  ;;  %v1979_v9 = vld [vmem:[%s2177_s29 + $0x18] sm:$0xff]   ;;  %v1980_v10 = vld [vmem:[%s2177_s29 + $0x20] sm:$0xff]   ;;  %v1981_v11 = vld [vmem:[%s2177_s29 + $0x28] sm:$0xff]   ;;  %s2002_s10 = scalar_lea.vmem %s2001_s24, 64  ;;  %p2003_p0 = scmp.lt.s32.totalorder %s2466_s22, %s2001_s24 }
  0x1e   : > { %1778 = vmatmul.mubr.msk.bf16.vlgmr.msra.gmra.mrb[0].mxu0 %vm440_vm2, %v1977_v7  ;;  %v1982_v12 = vld [vmem:[%s2177_s29 + $0x30] sm:$0xff]   ;;  %v1983_v13 = vld [vmem:[%s2177_s29 + $0x38] sm:$0xff]   ;;  %p2004_p1 = scmp.lt.s32.totalorder %s2002_s10, %s1996_s28 }
  0x1f   : > { %1781 = vmatprep.mubr.msk.bf16.mxu0 %vm440_vm2, %v1978_v8  ;;  %1814 = vmatpush3.bf16.msra.mxu0 %v2212_v16 }
  0x20   : > { %1815 = vmatprep.subr.bf16.mxu0 %v2217_v17  ;;  %p2005_p2 = por %p2004_p1, %p2003_p0 }
  0x22   : > { %p2006_p3 = pnand %p2005_p2, %p1999_p13 }
  0x23   : > { %1816 = vmatpush3.bf16.msra.mxu0 %v2217_v17 }
  0x24   : > { %1853 = vmatprep.subr.bf16.mxu0 %v2169_v5 }
  0x26   : > { %1782 = vmatmul.mubr.msk.bf16.gmra.mrb[4].mxu0 %vm440_vm2, %v1979_v9 }
  0x27   : > { %1785 = vmatprep.mubr.msk.bf16.mxu0 %vm440_vm2, %v1980_v10 }
  0x2e   : > { %1786 = vmatmul.mubr.msk.bf16.gmra.mrb[8].mxu0 %vm440_vm2, %v1981_v11 }
  0x2f   : > { %1789 = vmatprep.mubr.msk.bf16.mxu0 %vm440_vm2, %v1982_v12  ;;  %v2256_v12 = vld [vmem:[%s2515_s4] ss:$0 sm:$0xff] }
  0x36   : > { %1790 = vmatmul.mubr.msk.bf16.gmra.mrb[12].mxu0 %vm440_vm2, %v1983_v13 }
  0xf1   : > { %v1779_v19 = vpop.f32.mrb[0].mxu0 }
  0xf2   : > { %v515_v20 = vadd.f32 %v1779_v19, %v2227_v18  ;;  %v506_v21 = vpop.f32.mrb[1].mxu0 }
  0xf3   : > { %v507_v22 = vadd.f32 %v2227_v18, %v506_v21  ;;  %v1780_v23 = vpop.f32.mrb[2].mxu0 }
  0xf4   : > { %v518_v24 = vadd.f32 %v1780_v23, %v2227_v18  ;;  %v509_v25 = vpop.f32.mrb[3].mxu0  ;;  %v571_v27 = vmax.f32 %v515_v20, 0.0 }
  0xf5   : > { %v510_v26 = vadd.f32 %v2227_v18, %v509_v25  ;;  %v569_v29 = vmax.f32 %v507_v22, 0.0 }
  0xf6   : > { %v572_v28 = vmax.f32 %v518_v24, 0.0 }
  0xf7   : > { %v570_v30 = vmax.f32 %v510_v26, 0.0 }
  0xf8   : > { %v586_v31 = vpack.c.bf16 %v572_v28, %v571_v27 }
  0xf9   : > { %v1783_v32 = vpop.f32.mrb[4].mxu0  ;;  %v585_v33 = vpack.c.bf16 %v570_v30, %v569_v29 }
  0xfa   : > { %v531_v34 = vadd.f32 %v1783_v32, %v2227_v18  ;;  %v522_v35 = vpop.f32.mrb[5].mxu0 }
  0xfb   : > { %v523_v36 = vadd.f32 %v2227_v18, %v522_v35  ;;  %v1784_v37 = vpop.f32.mrb[6].mxu0  ;;  %1797 = vmatprep.mubr.msk.bf16.mxu1 %vm605_vm3, %v585_v33 }
  0xfc   : > { %v575_v38 = vmax.f32 %v531_v34, 0.0  ;;  %v534_v39 = vadd.f32 %v1784_v37, %v2227_v18  ;;  %v525_v40 = vpop.f32.mrb[7].mxu0  ;;  %1798 = vmatmul.mubr.msk.bf16.vlgmr.msra.gmra.mrb[0].mxu1 %vm605_vm3, %v586_v31 }
  0xfd   : > { %v573_v41 = vmax.f32 %v523_v36, 0.0  ;;  %v526_v42 = vadd.f32 %v2227_v18, %v525_v40 }
  0xfe   : > { %v576_v43 = vmax.f32 %v534_v39, 0.0 }
  0xff   : > { %v574_v44 = vmax.f32 %v526_v42, 0.0 }
 0x100   : > { %v588_v45 = vpack.c.bf16 %v576_v43, %v575_v38 }
 0x101   : > { %v587_v46 = vpack.c.bf16 %v574_v44, %v573_v41  ;;  %v1787_v47 = vpop.f32.mrb[8].mxu0 }
 0x102   : > { %v547_v48 = vadd.f32 %v1787_v47, %v2227_v18  ;;  %v538_v49 = vpop.f32.mrb[9].mxu0 }
 0x103   : > { %1801 = vmatprep.mubr.msk.bf16.mxu1 %vm605_vm3, %v587_v46  ;;  %v539_v50 = vadd.f32 %v2227_v18, %v538_v49  ;;  %v1788_v51 = vpop.f32.mrb[10].mxu0 }
 0x104   : > { %1802 = vmatmul.mubr.msk.bf16.gmra.mrb[4].mxu1 %vm605_vm3, %v588_v45  ;;  %v579_v52 = vmax.f32 %v547_v48, 0.0  ;;  %v550_v53 = vadd.f32 %v1788_v51, %v2227_v18  ;;  %v541_v54 = vpop.f32.mrb[11].mxu0 }
 0x105   : > { %v577_v55 = vmax.f32 %v539_v50, 0.0  ;;  %v542_v56 = vadd.f32 %v2227_v18, %v541_v54 }
 0x106   : > { %v580_v57 = vmax.f32 %v550_v53, 0.0 }
 0x107   : > { %v578_v58 = vmax.f32 %v542_v56, 0.0 }
 0x108   : > { %v590_v59 = vpack.c.bf16 %v580_v57, %v579_v52 }
 0x109   : > { %v589_v60 = vpack.c.bf16 %v578_v58, %v577_v55  ;;  %v1791_v61 = vpop.f32.mrb[12].mxu0 }
 0x10a   : > { %v563_v62 = vadd.f32 %v1791_v61, %v2227_v18  ;;  %v554_v63 = vpop.f32.mrb[13].mxu0 }
 0x10b   : > { %1805 = vmatprep.mubr.msk.bf16.mxu1 %vm605_vm3, %v589_v60  ;;  %v555_v0 = vadd.f32 %v2227_v18, %v554_v63  ;;  %v1792_v1 = vpop.f32.mrb[14].mxu0 }
 0x10c   : > { %1806 = vmatmul.mubr.msk.bf16.gmra.mrb[8].mxu1 %vm605_vm3, %v590_v59  ;;  %v583_v2 = vmax.f32 %v563_v62, 0.0  ;;  %v566_v3 = vadd.f32 %v1792_v1, %v2227_v18  ;;  %v557_v4 = vpop.f32.mrb[15].mxu0 }
 0x10d   : > { %v581_v6 = vmax.f32 %v555_v0, 0.0  ;;  %v558_v7 = vadd.f32 %v2227_v18, %v557_v4 }
 0x10e   : > { %v584_v8 = vmax.f32 %v566_v3, 0.0 }
 0x10f   : > { %v582_v9 = vmax.f32 %v558_v7, 0.0 }
 0x110   : > { %v592_v10 = vpack.c.bf16 %v584_v8, %v583_v2 }
 0x111   : > { %v591_v11 = vpack.c.bf16 %v582_v9, %v581_v6 }
 0x113   : > { %1809 = vmatprep.mubr.msk.bf16.mxu1 %vm605_vm3, %v591_v11  ;;  %v1989_v11 = vld [vmem:[%s2177_s29 + $0x48] sm:$0xff]  }
 0x114   : > { %1810 = vmatmul.mubr.msk.bf16.gmra.mrb[12].mxu1 %vm605_vm3, %v592_v10  ;;  %v1988_v10 = vld [vmem:[%s2177_s29 + $0x40] sm:$0xff]  }
 0x1cf   : > { %v1799_v13 = vpop.f32.mrb[0].mxu1 }
 0x1d0   : > { %v673_v19 = vadd.f32 %v1799_v13, %v2256_v12  ;;  %v664_v20 = vpop.f32.mrb[1].mxu1  ;;  %v1990_v13 = vld [vmem:[%s2177_s29 + $0x50] sm:$0xff]  }
 0x1d1   : > { %v665_v21 = vadd.f32 %v2256_v12, %v664_v20  ;;  %v1800_v22 = vpop.f32.mrb[2].mxu1  ;;  %v1992_v20 = vld [vmem:[%s2177_s29 + $0x60] sm:$0xff]  }
 0x1d2   : > { %v676_v23 = vadd.f32 %v1800_v22, %v2256_v12  ;;  %v667_v24 = vpop.f32.mrb[3].mxu1  ;;  %v729_v26 = vmax.f32 %v673_v19, 0.0  ;;  %v1991_v19 = vld [vmem:[%s2177_s29 + $0x58] sm:$0xff]   ;;  %v1994_v22 = vld [vmem:[%s2177_s29 + $0x70] sm:$0xff]  }
 0x1d3   : > { %v668_v25 = vadd.f32 %v2256_v12, %v667_v24  ;;  %v727_v28 = vmax.f32 %v665_v21, 0.0  ;;  %v1993_v21 = vld [vmem:[%s2177_s29 + $0x68] sm:$0xff]   ;;  %v2063_v24 = vmov 0  }
 0x1d4   : > { %v730_v27 = vmax.f32 %v676_v23, 0.0  ;;  %v1995_v23 = vld [vmem:[%s2177_s29 + $0x78] sm:$0xff]   ;;  %1974 = vset.pattern.permute.xlu0 %v2063_v24 }
 0x1d5   : > { %v728_v29 = vmax.f32 %v668_v25, 0.0  ;;  %v2309_v25 = vld [vmem:[%s2517_s6] ss:$0 sm:$0xff] }
 0x1d6   : > { %v744_v30 = vpack.c.bf16 %v730_v27, %v729_v26 }
 0x1d7   : > { %v743_v31 = vpack.c.bf16 %v728_v29, %v727_v28  ;;  %v1803_v32 = vpop.f32.mrb[4].mxu1 }
 0x1d8   : > { %v689_v33 = vadd.f32 %v1803_v32, %v2256_v12  ;;  %v680_v34 = vpop.f32.mrb[5].mxu1 }
 0x1d9   : > { %v681_v35 = vadd.f32 %v2256_v12, %v680_v34  ;;  %v1804_v36 = vpop.f32.mrb[6].mxu1  ;;  %1817 = vmatprep.mubr.msk.bf16.mxu0 %vm605_vm3, %v743_v31 }
 0x1da   : > { %v733_v37 = vmax.f32 %v689_v33, 0.0  ;;  %v692_v38 = vadd.f32 %v1804_v36, %v2256_v12  ;;  %v683_v39 = vpop.f32.mrb[7].mxu1  ;;  %1818 = vmatmul.mubr.msk.bf16.vlgmr.msra.gmra.mrb[16].mxu0 %vm605_vm3, %v744_v30 }
 0x1db   : > { %v731_v40 = vmax.f32 %v681_v35, 0.0  ;;  %v684_v41 = vadd.f32 %v2256_v12, %v683_v39  ;;  %1854 = vmatpush3.bf16.msra.mxu0 %v2169_v5 }
 0x1dc   : > { %v734_v42 = vmax.f32 %v692_v38, 0.0  ;;  %1891 = vmatprep.subr.bf16.mxu0 %v2212_v16 }
 0x1dd   : > { %v732_v43 = vmax.f32 %v684_v41, 0.0 }
 0x1de   : > { %v746_v44 = vpack.c.bf16 %v734_v42, %v733_v37 }
 0x1df   : > { %v745_v45 = vpack.c.bf16 %v732_v43, %v731_v40  ;;  %v1807_v46 = vpop.f32.mrb[8].mxu1 }
 0x1e0   : > { %v705_v47 = vadd.f32 %v1807_v46, %v2256_v12  ;;  %v696_v48 = vpop.f32.mrb[9].mxu1 }
 0x1e1   : > { %1821 = vmatprep.mubr.msk.bf16.mxu0 %vm605_vm3, %v745_v45  ;;  %v697_v49 = vadd.f32 %v2256_v12, %v696_v48  ;;  %v1808_v50 = vpop.f32.mrb[10].mxu1 }
 0x1e2   : > { %1822 = vmatmul.mubr.msk.bf16.gmra.mrb[20].mxu0 %vm605_vm3, %v746_v44  ;;  %v737_v51 = vmax.f32 %v705_v47, 0.0  ;;  %v708_v5 = vadd.f32 %v1808_v50, %v2256_v12  ;;  %v699_v52 = vpop.f32.mrb[11].mxu1 }
 0x1e3   : > { %v735_v53 = vmax.f32 %v697_v49, 0.0  ;;  %v700_v54 = vadd.f32 %v2256_v12, %v699_v52 }
 0x1e4   : > { %v738_v55 = vmax.f32 %v708_v5, 0.0 }
 0x1e5   : > { %v736_v56 = vmax.f32 %v700_v54, 0.0 }
 0x1e6   : > { %v748_v57 = vpack.c.bf16 %v738_v55, %v737_v51 }
 0x1e7   : > { %v747_v58 = vpack.c.bf16 %v736_v56, %v735_v53  ;;  %v1811_v59 = vpop.f32.mrb[12].mxu1 }
 0x1e8   : > { %v721_v60 = vadd.f32 %v1811_v59, %v2256_v12  ;;  %v712_v61 = vpop.f32.mrb[13].mxu1 }
 0x1e9   : > { %1825 = vmatprep.mubr.msk.bf16.mxu0 %vm605_vm3, %v747_v58  ;;  %v713_v62 = vadd.f32 %v2256_v12, %v712_v61  ;;  %v1812_v63 = vpop.f32.mrb[14].mxu1 }
 0x1ea   : > { %1826 = vmatmul.mubr.msk.bf16.gmra.mrb[24].mxu0 %vm605_vm3, %v748_v57  ;;  %v741_v0 = vmax.f32 %v721_v60, 0.0  ;;  %v724_v1 = vadd.f32 %v1812_v63, %v2256_v12  ;;  %v715_v2 = vpop.f32.mrb[15].mxu1 }
 0x1eb   : > { %v739_v3 = vmax.f32 %v713_v62, 0.0  ;;  %v716_v4 = vadd.f32 %v2256_v12, %v715_v2 }
 0x1ec   : > { %v742_v6 = vmax.f32 %v724_v1, 0.0 }
 0x1ed   : > { %v740_v7 = vmax.f32 %v716_v4, 0.0 }
 0x1ee   : > { %v750_v8 = vpack.c.bf16 %v742_v6, %v741_v0 }
 0x1ef   : > { %v749_v9 = vpack.c.bf16 %v740_v7, %v739_v3 }
 0x1f1   : > { %1829 = vmatprep.mubr.msk.bf16.mxu0 %vm605_vm3, %v749_v9 }
 0x1f2   : > { %1830 = vmatmul.mubr.msk.bf16.gmra.mrb[28].mxu0 %vm605_vm3, %v750_v8 }
 0x1f3   : > { %1855 = vmatprep.mubr.msk.bf16.mxu0 %vm440_vm2, %v1988_v10 }
 0x1fa   : > { %1856 = vmatmul.mubr.msk.bf16.vlgmr.msra.gmra.mrb[32].mxu0 %vm440_vm2, %v1989_v11 }
 0x1fb   : > { %1859 = vmatprep.mubr.msk.bf16.mxu0 %vm440_vm2, %v1990_v13  ;;  %1892 = vmatpush3.bf16.msra.mxu0 %v2212_v16  ;;  %v2061_v16 = vmov 0.0  }
 0x1fc   : > { %1893 = vmatprep.subr.bf16.mxu0 %v2217_v17  ;;  %1833 = vmatprep.subr.bf16.mxu1 %v2061_v16 }
 0x1fd   : > { %1849 = vmatprep.mubr.msk.bf16.mxu1 %vm2062_vm4, %v2061_v16 }
 0x1ff   : > { %1894 = vmatpush3.bf16.msra.mxu0 %v2217_v17  ;;  %v369_v17 = vld [vmem:[#allocation2] sm:$0x1] }
 0x200   : > { %372 = vperm.xlu0 %1974, %v369_v17  }
 0x202   : > { %1860 = vmatmul.mubr.msk.bf16.gmra.mrb[36].mxu0 %vm440_vm2, %v1991_v19 }
 0x203   : > { %1863 = vmatprep.mubr.msk.bf16.mxu0 %vm440_vm2, %v1992_v20 }
 0x20a   : > { %1864 = vmatmul.mubr.msk.bf16.gmra.mrb[40].mxu0 %vm440_vm2, %v1993_v21 }
 0x20b   : > { %1867 = vmatprep.mubr.msk.bf16.mxu0 %vm440_vm2, %v1994_v22 }
 0x212   : > { %1868 = vmatmul.mubr.msk.bf16.gmra.mrb[44].mxu0 %vm440_vm2, %v1995_v23 }
 0x2ad   : > { %v1819_v26 = vpop.f32.mrb[16].mxu0 }
 0x2ae   : > { %v830_v27 = vadd.f32 %v1819_v26, %v2309_v25  ;;  %v821_v28 = vpop.f32.mrb[17].mxu0 }
 0x2af   : > { %v822_v29 = vadd.f32 %v2309_v25, %v821_v28  ;;  %v1820_v30 = vpop.f32.mrb[18].mxu0 }
 0x2b0   : > { %v833_v31 = vadd.f32 %v1820_v30, %v2309_v25  ;;  %v824_v32 = vpop.f32.mrb[19].mxu0  ;;  %v886_v34 = vmax.f32 %v830_v27, 0.0 }
 0x2b1   : > { %v825_v33 = vadd.f32 %v2309_v25, %v824_v32  ;;  %v884_v36 = vmax.f32 %v822_v29, 0.0 }
 0x2b2   : > { %v887_v35 = vmax.f32 %v833_v31, 0.0 }
 0x2b3   : > { %v885_v37 = vmax.f32 %v825_v33, 0.0 }
 0x2b4   : > { %v901_v38 = vpack.c.bf16 %v887_v35, %v886_v34 }
 0x2b5   : > { %v900_v39 = vpack.c.bf16 %v885_v37, %v884_v36  ;;  %v1823_v40 = vpop.f32.mrb[20].mxu0 }
 0x2b6   : > { %v846_v41 = vadd.f32 %v1823_v40, %v2309_v25  ;;  %v837_v42 = vpop.f32.mrb[21].mxu0  ;;  %v915_v57 = vsel %vm605_vm3, %v901_v38, 0 }
 0x2b7   : > { %v838_v43 = vadd.f32 %v2309_v25, %v837_v42  ;;  %v1824_v44 = vpop.f32.mrb[22].mxu0  ;;  %v912_v45 = vsel %vm605_vm3, %v900_v39, 0 }
 0x2b8   : > { %v849_v46 = vadd.f32 %v1824_v44, %v2309_v25  ;;  %v840_v47 = vpop.f32.mrb[23].mxu0  ;;  %1834 = vmatpush3.bf16.xpose.msra.mxu1 %v912_v45  ;;  %v890_v49 = vmax.f32 %v846_v41, 0.0 }
 0x2b9   : > { %v841_v48 = vadd.f32 %v2309_v25, %v840_v47  ;;  %1835 = vmatprep.subr.bf16.mxu1 %v2061_v16  ;;  %v888_v51 = vmax.f32 %v838_v43, 0.0 }
 0x2ba   : > { %v891_v50 = vmax.f32 %v849_v46, 0.0 }
 0x2bb   : > { %v889_v5 = vmax.f32 %v841_v48, 0.0 }
 0x2bc   : > { %v903_v52 = vpack.c.bf16 %v891_v50, %v890_v49 }
 0x2bd   : > { %v902_v53 = vpack.c.bf16 %v889_v5, %v888_v51  ;;  %v1827_v54 = vpop.f32.mrb[24].mxu0 }
 0x2be   : > { %v862_v55 = vadd.f32 %v1827_v54, %v2309_v25  ;;  %v853_v56 = vpop.f32.mrb[25].mxu0  ;;  %v921_v30 = vsel %vm605_vm3, %v903_v52, 0 }
 0x2bf   : > { %v854_v58 = vadd.f32 %v2309_v25, %v853_v56  ;;  %v1828_v59 = vpop.f32.mrb[26].mxu0  ;;  %v918_v9 = vsel %vm605_vm3, %v902_v53, 0 }
 0x2c0   : > { %1836 = vmatpush3.bf16.xpose.msra.mxu1 %v915_v57  ;;  %v894_v60 = vmax.f32 %v862_v55, 0.0  ;;  %v865_v61 = vadd.f32 %v1828_v59, %v2309_v25  ;;  %v856_v62 = vpop.f32.mrb[27].mxu0 }
 0x2c1   : > { %v892_v63 = vmax.f32 %v854_v58, 0.0  ;;  %v857_v0 = vadd.f32 %v2309_v25, %v856_v62  ;;  %1837 = vmatprep.subr.bf16.mxu1 %v2061_v16 }
 0x2c2   : > { %v895_v1 = vmax.f32 %v865_v61, 0.0 }
 0x2c3   : > { %v893_v2 = vmax.f32 %v857_v0, 0.0 }
 0x2c4   : > { %v905_v3 = vpack.c.bf16 %v895_v1, %v894_v60 }
 0x2c5   : > { %v904_v4 = vpack.c.bf16 %v893_v2, %v892_v63  ;;  %v1831_v6 = vpop.f32.mrb[28].mxu0 }
 0x2c6   : > { %v878_v7 = vadd.f32 %v1831_v6, %v2309_v25  ;;  %v869_v8 = vpop.f32.mrb[29].mxu0  ;;  %v927_v59 = vsel %vm605_vm3, %v905_v3, 0 }
 0x2c7   : > { %v870_v10 = vadd.f32 %v2309_v25, %v869_v8  ;;  %v1832_v11 = vpop.f32.mrb[30].mxu0  ;;  %v924_v45 = vsel %vm605_vm3, %v904_v4, 0 }
 0x2c8   : > { %1838 = vmatpush3.bf16.xpose.msra.mxu1 %v918_v9  ;;  %v898_v13 = vmax.f32 %v878_v7, 0.0  ;;  %v881_v19 = vadd.f32 %v1832_v11, %v2309_v25  ;;  %v872_v20 = vpop.f32.mrb[31].mxu0 }
 0x2c9   : > { %1839 = vmatprep.subr.bf16.mxu1 %v2061_v16  ;;  %v896_v21 = vmax.f32 %v870_v10, 0.0  ;;  %v873_v22 = vadd.f32 %v2309_v25, %v872_v20 }
 0x2ca   : > { %v899_v23 = vmax.f32 %v881_v19, 0.0 }
 0x2cb   : > { %v897_v17 = vmax.f32 %v873_v22, 0.0 }
 0x2cc   : > { %v2333_v24 = vpack.c.bf16 %v899_v23, %v898_v13 }
 0x2cd   : > { %v906_v26 = vpack.c.bf16 %v897_v17, %v896_v21  ;;  %v1857_v27 = vpop.f32.mrb[32].mxu0 }
 0x2ce   : > { %v1104_v28 = vadd.f32 %v1857_v27, %v2227_v18  ;;  %v1095_v29 = vpop.f32.mrb[33].mxu0 }
 0x2cf   : > { %v1096_v31 = vadd.f32 %v2227_v18, %v1095_v29  ;;  %v1858_v32 = vpop.f32.mrb[34].mxu0  ;;  %v930_v11 = vsel %vm605_vm3, %v906_v26, 0  ;;  %v933_v26 = vsel %vm605_vm3, %v2333_v24, 0  ;;  %v373_v24 = vpop.permute.xlu0 %372 }
 0x2d0   : > { %1840 = vmatpush3.bf16.xpose.msra.mxu1 %v921_v30  ;;  %v1160_v33 = vmax.f32 %v1104_v28, 0.0  ;;  %v1107_v34 = vadd.f32 %v1858_v32, %v2227_v18  ;;  %v1098_v35 = vpop.f32.mrb[35].mxu0 }
 0x2d1   : > { %1841 = vmatprep.subr.bf16.mxu1 %v2061_v16  ;;  %v1158_v36 = vmax.f32 %v1096_v31, 0.0  ;;  %v1099_v37 = vadd.f32 %v2227_v18, %v1098_v35  ;;  %v2367_v31 = vld [vmem:[%s2518_s7] sm:$0xf] }
 0x2d2   : > { %v1161_v38 = vmax.f32 %v1107_v34, 0.0 }
 0x2d3   : > { %v1159_v39 = vmax.f32 %v1099_v37, 0.0 }
 0x2d4   : > { %v2341_v40 = vpack.c.bf16 %v1161_v38, %v1160_v33 }
 0x2d5   : > { %v1174_v41 = vpack.c.bf16 %v1159_v39, %v1158_v36  ;;  %v1861_v42 = vpop.f32.mrb[36].mxu0 }
 0x2d6   : > { %v1120_v43 = vadd.f32 %v1861_v42, %v2227_v18  ;;  %v1111_v44 = vpop.f32.mrb[37].mxu0 }
 0x2d7   : > { %v1112_v46 = vadd.f32 %v2227_v18, %v1111_v44  ;;  %v1862_v47 = vpop.f32.mrb[38].mxu0 }
 0x2d8   : > { %1842 = vmatpush3.bf16.xpose.msra.mxu1 %v924_v45  ;;  %v1164_v48 = vmax.f32 %v1120_v43, 0.0  ;;  %v1123_v49 = vadd.f32 %v1862_v47, %v2227_v18  ;;  %v1114_v50 = vpop.f32.mrb[39].mxu0 }
 0x2d9   : > { %1843 = vmatprep.subr.bf16.mxu1 %v2061_v16  ;;  %v1162_v51 = vmax.f32 %v1112_v46, 0.0  ;;  %v1115_v5 = vadd.f32 %v2227_v18, %v1114_v50 }
 0x2da   : > { %v1165_v52 = vmax.f32 %v1123_v49, 0.0 }
 0x2db   : > { %v1163_v53 = vmax.f32 %v1115_v5, 0.0 }
 0x2dc   : > { %v1177_v54 = vpack.c.bf16 %v1165_v52, %v1164_v48 }
 0x2dd   : > { %v1176_v55 = vpack.c.bf16 %v1163_v53, %v1162_v51  ;;  %v1865_v56 = vpop.f32.mrb[40].mxu0 }
 0x2de   : > { %v1136_v57 = vadd.f32 %v1865_v56, %v2227_v18  ;;  %v1127_v58 = vpop.f32.mrb[41].mxu0 }
 0x2df   : > { %v1128_v60 = vadd.f32 %v2227_v18, %v1127_v58  ;;  %v1866_v61 = vpop.f32.mrb[42].mxu0 }
 0x2e0   : > { %1844 = vmatpush3.bf16.xpose.msra.mxu1 %v927_v59  ;;  %v1168_v62 = vmax.f32 %v1136_v57, 0.0  ;;  %v1139_v63 = vadd.f32 %v1866_v61, %v2227_v18  ;;  %v1130_v0 = vpop.f32.mrb[43].mxu0 }
 0x2e1   : > { %1845 = vmatprep.subr.bf16.mxu1 %v2061_v16  ;;  %v1166_v1 = vmax.f32 %v1128_v60, 0.0  ;;  %v1131_v2 = vadd.f32 %v2227_v18, %v1130_v0 }
 0x2e2   : > { %v1169_v4 = vmax.f32 %v1139_v63, 0.0 }
 0x2e3   : > { %v1167_v6 = vmax.f32 %v1131_v2, 0.0 }
 0x2e4   : > { %v1179_v7 = vpack.c.bf16 %v1169_v4, %v1168_v62 }
 0x2e5   : > { %v1178_v8 = vpack.c.bf16 %v1167_v6, %v1166_v1  ;;  %v1869_v9 = vpop.f32.mrb[44].mxu0 }
 0x2e6   : > { %v1152_v3 = vadd.f32 %v1869_v9, %v2227_v18  ;;  %v1143_v10 = vpop.f32.mrb[45].mxu0 }
 0x2e7   : > { %v1144_v13 = vadd.f32 %v2227_v18, %v1143_v10  ;;  %v1870_v19 = vpop.f32.mrb[46].mxu0 }
 0x2e8   : > { %1846 = vmatpush3.bf16.xpose.msra.mxu1 %v930_v11  ;;  %v1172_v20 = vmax.f32 %v1152_v3, 0.0  ;;  %v1155_v21 = vadd.f32 %v1870_v19, %v2227_v18  ;;  %v1146_v22 = vpop.f32.mrb[47].mxu0 }
 0x2e9   : > { %1847 = vmatprep.subr.bf16.mxu1 %v2061_v16  ;;  %v1170_v23 = vmax.f32 %v1144_v13, 0.0  ;;  %v1147_v17 = vadd.f32 %v2227_v18, %v1146_v22 }
 0x2ea   : > { %v1173_v27 = vmax.f32 %v1155_v21, 0.0 }
 0x2eb   : > { %v1171_v28 = vmax.f32 %v1147_v17, 0.0 }
 0x2ec   : > { %v1181_v29 = vpack.c.bf16 %v1173_v27, %v1172_v20 }
 0x2ed   : > { %v1180_v30 = vpack.c.bf16 %v1171_v28, %v1170_v23 }
 0x2f0   : > { %1848 = vmatpush3.bf16.xpose.msra.mxu1 %v933_v26 }
 0x2f1   : > { %1871 = vmatprep.subr.bf16.mxu1 %v2198_v14 }
 0x2f7   : > { %1850 = vmatmul.mubr.msk.bf16.vlgmr.msra.gmra.mrb[16].mxu1 %vm605_vm3, %v2367_v31 }
 0x2f8   : > { %1872 = vmatpush3.bf16.msra.mxu1 %v2198_v14  ;;  %1875 = vmatprep.mubr.msk.bf16.mxu1 %vm605_vm3, %v1174_v41  ;;  %v375_v14 = vlaneseq }
 0x2f9   : > { %1873 = vmatprep.subr.bf16.mxu1 %v2205_v15 }
 0x2fa   : > { %vm2391_vm5 = vcmp.lt.s32.totalorder %v375_v14, 128 }
 0x2fc   : > { %1874 = vmatpush3.bf16.msra.mxu1 %v2205_v15  ;;  %v376_v15 = vshrl.u32 %v375_v14, 7 }
 0x2fd   : > { %1911 = vmatprep.subr.bf16.mxu1 %v2061_v16 }
 0x2fe   : > { %v377_v18 = vsub.s32 0, %v376_v15 }
 0x2ff   : > { %1876 = vmatmul.mubr.msk.bf16.vlgmr.msra.gmra.mrb[20].mxu1 %vm605_vm3, %v2341_v40 }
 0x300   : > { %1879 = vmatprep.mubr.msk.bf16.mxu1 %vm605_vm3, %v1176_v55  ;;  %v2387_v32 = vrot.slane %v373_v24, %v377_v18 }
 0x307   : > { %1880 = vmatmul.mubr.msk.bf16.gmra.mrb[24].mxu1 %vm605_vm3, %v1177_v54 }
 0x308   : > { %1883 = vmatprep.mubr.msk.bf16.mxu1 %vm605_vm3, %v1178_v8 }
 0x30f   : > { %1884 = vmatmul.mubr.msk.bf16.gmra.mrb[28].mxu1 %vm605_vm3, %v1179_v7 }
 0x310   : > { %1887 = vmatprep.mubr.msk.bf16.mxu1 %vm605_vm3, %v1180_v30 }
 0x317   : > { %1888 = vmatmul.mubr.msk.bf16.gmra.mrb[32].mxu1 %vm605_vm3, %v1181_v29 }
 0x318   : > { %1927 = vmatprep.mubr.msk.bf16.mxu1 %vm2062_vm4, %v2061_v16 }
 0x3ca   : > { %v969_v34 = vpop.f32.mrb[16].mxu1 }
 0x3cb   : > { %v975_v35 = vadd.f32 %v969_v34, %v2387_v32  ;;  %v1851_v36 = vpop.f32.mrb[17].mxu1 }
 0x3cc   : > { %v972_v37 = vpop.f32.mrb[18].mxu1 }
 0x3cd   : > { %980 = vst.msk [vmem:[%s2396_s18] sm:$0x1] %vm2391_vm5, %v975_v35  ;;  %v1852_v38 = vpop.f32.mrb[19].mxu1 }
 0x3d2   : > { %v1877_v39 = vpop.f32.mrb[20].mxu1 }
 0x3d3   : > { %v1249_v40 = vadd.f32 %v1877_v39, %v2256_v12  ;;  %v1240_v41 = vpop.f32.mrb[21].mxu1 }
 0x3d4   : > { %v1241_v42 = vadd.f32 %v2256_v12, %v1240_v41  ;;  %v1878_v43 = vpop.f32.mrb[22].mxu1 }
 0x3d5   : > { %v1252_v44 = vadd.f32 %v1878_v43, %v2256_v12  ;;  %v1243_v45 = vpop.f32.mrb[23].mxu1  ;;  %v1305_v47 = vmax.f32 %v1249_v40, 0.0 }
 0x3d6   : > { %v1244_v46 = vadd.f32 %v2256_v12, %v1243_v45  ;;  %v1303_v49 = vmax.f32 %v1241_v42, 0.0 }
 0x3d7   : > { %v1306_v48 = vmax.f32 %v1252_v44, 0.0 }
 0x3d8   : > { %v1304_v50 = vmax.f32 %v1244_v46, 0.0 }
 0x3d9   : > { %v1320_v51 = vpack.c.bf16 %v1306_v48, %v1305_v47 }
 0x3da   : > { %v1319_v5 = vpack.c.bf16 %v1304_v50, %v1303_v49  ;;  %v1881_v52 = vpop.f32.mrb[24].mxu1 }
 0x3db   : > { %v1265_v53 = vadd.f32 %v1881_v52, %v2256_v12  ;;  %v1256_v54 = vpop.f32.mrb[25].mxu1 }
 0x3dc   : > { %v1257_v55 = vadd.f32 %v2256_v12, %v1256_v54  ;;  %v1882_v56 = vpop.f32.mrb[26].mxu1  ;;  %1895 = vmatprep.mubr.msk.bf16.mxu0 %vm605_vm3, %v1319_v5 }
 0x3dd   : > { %v1309_v57 = vmax.f32 %v1265_v53, 0.0  ;;  %v1268_v58 = vadd.f32 %v1882_v56, %v2256_v12  ;;  %v1259_v59 = vpop.f32.mrb[27].mxu1  ;;  %1896 = vmatmul.mubr.msk.bf16.vlgmr.msra.gmra.mrb[48].mxu0 %vm605_vm3, %v1320_v51 }
 0x3de   : > { %v1307_v60 = vmax.f32 %v1257_v55, 0.0  ;;  %v1260_v61 = vadd.f32 %v2256_v12, %v1259_v59 }
 0x3df   : > { %v1310_v62 = vmax.f32 %v1268_v58, 0.0 }
 0x3e0   : > { %v1308_v63 = vmax.f32 %v1260_v61, 0.0 }
 0x3e1   : > { %v1322_v0 = vpack.c.bf16 %v1310_v62, %v1309_v57 }
 0x3e2   : > { %v1321_v1 = vpack.c.bf16 %v1308_v63, %v1307_v60  ;;  %v1885_v2 = vpop.f32.mrb[28].mxu1 }
 0x3e3   : > { %v1281_v4 = vadd.f32 %v1885_v2, %v2256_v12  ;;  %v1272_v6 = vpop.f32.mrb[29].mxu1 }
 0x3e4   : > { %1899 = vmatprep.mubr.msk.bf16.mxu0 %vm605_vm3, %v1321_v1  ;;  %v1273_v7 = vadd.f32 %v2256_v12, %v1272_v6  ;;  %v1886_v8 = vpop.f32.mrb[30].mxu1 }
 0x3e5   : > { %1900 = vmatmul.mubr.msk.bf16.gmra.mrb[52].mxu0 %vm605_vm3, %v1322_v0  ;;  %v1313_v9 = vmax.f32 %v1281_v4, 0.0  ;;  %v1284_v3 = vadd.f32 %v1886_v8, %v2256_v12  ;;  %v1275_v10 = vpop.f32.mrb[31].mxu1 }
 0x3e6   : > { %v1311_v11 = vmax.f32 %v1273_v7, 0.0  ;;  %v1276_v13 = vadd.f32 %v2256_v12, %v1275_v10 }
 0x3e7   : > { %v1314_v19 = vmax.f32 %v1284_v3, 0.0 }
 0x3e8   : > { %v1312_v20 = vmax.f32 %v1276_v13, 0.0 }
 0x3e9   : > { %v1324_v21 = vpack.c.bf16 %v1314_v19, %v1313_v9 }
 0x3ea   : > { %v1323_v22 = vpack.c.bf16 %v1312_v20, %v1311_v11  ;;  %v1889_v23 = vpop.f32.mrb[32].mxu1 }
 0x3eb   : > { %v1297_v17 = vadd.f32 %v1889_v23, %v2256_v12  ;;  %v1288_v27 = vpop.f32.mrb[33].mxu1 }
 0x3ec   : > { %1903 = vmatprep.mubr.msk.bf16.mxu0 %vm605_vm3, %v1323_v22  ;;  %v1289_v28 = vadd.f32 %v2256_v12, %v1288_v27  ;;  %v1890_v29 = vpop.f32.mrb[34].mxu1 }
 0x3ed   : > { %1904 = vmatmul.mubr.msk.bf16.gmra.mrb[56].mxu0 %vm605_vm3, %v1324_v21  ;;  %v1317_v30 = vmax.f32 %v1297_v17, 0.0  ;;  %v1300_v26 = vadd.f32 %v1890_v29, %v2256_v12  ;;  %v1291_v14 = vpop.f32.mrb[35].mxu1 }
 0x3ee   : > { %v1315_v15 = vmax.f32 %v1289_v28, 0.0  ;;  %v1292_v18 = vadd.f32 %v2256_v12, %v1291_v14 }
 0x3ef   : > { %v1318_v24 = vmax.f32 %v1300_v26, 0.0 }
 0x3f0   : > { %v1316_v34 = vmax.f32 %v1292_v18, 0.0 }
 0x3f1   : > { %v1326_v35 = vpack.c.bf16 %v1318_v24, %v1317_v30 }
 0x3f2   : > { %v1325_v36 = vpack.c.bf16 %v1316_v34, %v1315_v15 }
 0x3f4   : > { %1907 = vmatprep.mubr.msk.bf16.mxu0 %vm605_vm3, %v1325_v36 }
 0x3f5   : > { %1908 = vmatmul.mubr.msk.bf16.gmra.mrb[60].mxu0 %vm605_vm3, %v1326_v35 }
 0x4b0   : > { %v1897_v37 = vpop.f32.mrb[48].mxu0 }
 0x4b1   : > { %v1394_v38 = vadd.f32 %v1897_v37, %v2309_v25  ;;  %v1385_v39 = vpop.f32.mrb[49].mxu0 }
 0x4b2   : > { %v1386_v40 = vadd.f32 %v2309_v25, %v1385_v39  ;;  %v1898_v41 = vpop.f32.mrb[50].mxu0 }
 0x4b3   : > { %v1397_v42 = vadd.f32 %v1898_v41, %v2309_v25  ;;  %v1388_v43 = vpop.f32.mrb[51].mxu0  ;;  %v1450_v44 = vmax.f32 %v1394_v38, 0.0 }
 0x4b4   : > { %v1389_v12 = vadd.f32 %v2309_v25, %v1388_v43  ;;  %v1448_v46 = vmax.f32 %v1386_v40, 0.0 }
 0x4b5   : > { %v1451_v45 = vmax.f32 %v1397_v42, 0.0 }
 0x4b6   : > { %v1449_v47 = vmax.f32 %v1389_v12, 0.0 }
 0x4b7   : > { %v1465_v48 = vpack.c.bf16 %v1451_v45, %v1450_v44 }
 0x4b8   : > { %v1464_v49 = vpack.c.bf16 %v1449_v47, %v1448_v46  ;;  %v1901_v50 = vpop.f32.mrb[52].mxu0 }
 0x4b9   : > { %v1410_v51 = vadd.f32 %v1901_v50, %v2309_v25  ;;  %v1401_v5 = vpop.f32.mrb[53].mxu0  ;;  %v1476_v4 = vsel %vm605_vm3, %v1465_v48, 0 }
 0x4ba   : > { %v1402_v52 = vadd.f32 %v2309_v25, %v1401_v5  ;;  %v1902_v53 = vpop.f32.mrb[54].mxu0  ;;  %v1473_v54 = vsel %vm605_vm3, %v1464_v49, 0 }
 0x4bb   : > { %v1413_v55 = vadd.f32 %v1902_v53, %v2309_v25  ;;  %v1404_v56 = vpop.f32.mrb[55].mxu0  ;;  %1912 = vmatpush3.bf16.xpose.msra.mxu1 %v1473_v54  ;;  %v1454_v58 = vmax.f32 %v1410_v51, 0.0 }
 0x4bc   : > { %v1405_v57 = vadd.f32 %v2309_v25, %v1404_v56  ;;  %1913 = vmatprep.subr.bf16.mxu1 %v2061_v16  ;;  %v1452_v60 = vmax.f32 %v1402_v52, 0.0 }
 0x4bd   : > { %v1455_v59 = vmax.f32 %v1413_v55, 0.0 }
 0x4be   : > { %v1453_v61 = vmax.f32 %v1405_v57, 0.0 }
 0x4bf   : > { %v1467_v62 = vpack.c.bf16 %v1455_v59, %v1454_v58 }
 0x4c0   : > { %v1466_v63 = vpack.c.bf16 %v1453_v61, %v1452_v60  ;;  %v1905_v0 = vpop.f32.mrb[56].mxu0 }
 0x4c1   : > { %v1426_v1 = vadd.f32 %v1905_v0, %v2309_v25  ;;  %v1417_v2 = vpop.f32.mrb[57].mxu0  ;;  %v1482_v37 = vsel %vm605_vm3, %v1467_v62, 0 }
 0x4c2   : > { %v1418_v6 = vadd.f32 %v2309_v25, %v1417_v2  ;;  %v1906_v7 = vpop.f32.mrb[58].mxu0  ;;  %v1479_v27 = vsel %vm605_vm3, %v1466_v63, 0 }
 0x4c3   : > { %1914 = vmatpush3.bf16.xpose.msra.mxu1 %v1476_v4  ;;  %v1458_v8 = vmax.f32 %v1426_v1, 0.0  ;;  %v1429_v9 = vadd.f32 %v1906_v7, %v2309_v25  ;;  %v1420_v3 = vpop.f32.mrb[59].mxu0 }
 0x4c4   : > { %v1456_v10 = vmax.f32 %v1418_v6, 0.0  ;;  %v1421_v11 = vadd.f32 %v2309_v25, %v1420_v3  ;;  %1915 = vmatprep.subr.bf16.mxu1 %v2061_v16 }
 0x4c5   : > { %v1459_v13 = vmax.f32 %v1429_v9, 0.0 }
 0x4c6   : > { %v1457_v19 = vmax.f32 %v1421_v11, 0.0 }
 0x4c7   : > { %v1469_v20 = vpack.c.bf16 %v1459_v13, %v1458_v8 }
 0x4c8   : > { %v1468_v21 = vpack.c.bf16 %v1457_v19, %v1456_v10  ;;  %v1909_v22 = vpop.f32.mrb[60].mxu0 }
 0x4c9   : > { %v1442_v23 = vadd.f32 %v1909_v22, %v2309_v25  ;;  %v1433_v17 = vpop.f32.mrb[61].mxu0  ;;  %v1488_v39 = vsel %vm605_vm3, %v1469_v20, 0 }
 0x4ca   : > { %v1434_v28 = vadd.f32 %v2309_v25, %v1433_v17  ;;  %v1910_v29 = vpop.f32.mrb[62].mxu0  ;;  %v1485_v38 = vsel %vm605_vm3, %v1468_v21, 0 }
 0x4cb   : > { %1916 = vmatpush3.bf16.xpose.msra.mxu1 %v1479_v27  ;;  %v1462_v30 = vmax.f32 %v1442_v23, 0.0  ;;  %v1445_v26 = vadd.f32 %v1910_v29, %v2309_v25  ;;  %v1436_v14 = vpop.f32.mrb[63].mxu0 }
 0x4cc   : > { %1917 = vmatprep.subr.bf16.mxu1 %v2061_v16  ;;  %v1460_v15 = vmax.f32 %v1434_v28, 0.0  ;;  %v1437_v18 = vadd.f32 %v2309_v25, %v1436_v14 }
 0x4cd   : > { %v1463_v24 = vmax.f32 %v1445_v26, 0.0 }
 0x4ce   : > { %v1461_v34 = vmax.f32 %v1437_v18, 0.0 }
 0x4cf   : > { %v1471_v35 = vpack.c.bf16 %v1463_v24, %v1462_v30 }
 0x4d0   : > { %v1470_v36 = vpack.c.bf16 %v1461_v34, %v1460_v15 }
 0x4d1   : > { %v1494_v40 = vsel %vm605_vm3, %v1471_v35, 0 }
 0x4d2   : > { %v1491_v25 = vsel %vm605_vm3, %v1470_v36, 0 }
 0x4d3   : > { %1918 = vmatpush3.bf16.xpose.msra.mxu1 %v1482_v37 }
 0x4d4   : > { %1919 = vmatprep.subr.bf16.mxu1 %v2061_v16 }
 0x4db   : > { %1920 = vmatpush3.bf16.xpose.msra.mxu1 %v1485_v38 }
 0x4dc   : > { %1921 = vmatprep.subr.bf16.mxu1 %v2061_v16 }
 0x4e3   : > { %1922 = vmatpush3.bf16.xpose.msra.mxu1 %v1488_v39 }
 0x4e4   : > { %1923 = vmatprep.subr.bf16.mxu1 %v2061_v16 }
 0x4eb   : > { %1924 = vmatpush3.bf16.xpose.msra.mxu1 %v1491_v25 }
 0x4ec   : > { %1925 = vmatprep.subr.bf16.mxu1 %v2061_v16 }
 0x4f3   : > { %1926 = vmatpush3.bf16.xpose.msra.mxu1 %v1494_v40 }
 0x4fa   : > { %1928 = vmatmul.mubr.msk.bf16.vlgmr.msra.gmra.mrb[36].mxu1 %vm605_vm3, %v2367_v31 }
 0x5cd   : > { %v1530_v41 = vpop.f32.mrb[36].mxu1 }
 0x5ce   : > { %v1536_v42 = vadd.f32 %v1530_v41, %v2387_v32  ;;  %v1929_v43 = vpop.f32.mrb[37].mxu1 }
 0x5cf   : > { %v1533_v16 = vpop.f32.mrb[38].mxu1 }
 0x5d0   : > { %1537 = vst.msk [vmem:[%s2396_s18 + $0x1] sm:$0x1] %vm2391_vm5, %v1536_v42  ;;  %v1930_v31 = vpop.f32.mrb[39].mxu1 }
 0x5d1   : > { %2009 = shalt.err (!%p2006_p3)
}
 0x5d2   : > { %s2010_s29 = scalar_lea.hbm %s2464_s26, 32  ;;  %s2014_s17 = scalar_lea.hbm %s2520_s9, 128 }
 0x5d3   : > { %p2011_p4 = scmp.ne.s32.totalorder %s2464_s26, %s2010_s29  ;;  %p2015_p9 = scmp.lt.u32.totalorder %s2464_s26, %s2520_s9 }
 0x5d4   : > { %p2016_p10 = scmp.lt.u32.totalorder %s2014_s17, %s2010_s29  ;;  %p2018_p12 = scmp.lt.u32.totalorder %s2010_s29, %s2464_s26 }
 0x5d5   : > { %p2012_p7 = pnand %p2011_p4, %p2153_p5 }
 0x5d6   : > { %p2017_p11 = por %p2016_p10, %p2015_p9 }
 0x5d7   : > { %p2013_p8 = pneg %p2012_p7 }
 0x5d8   : > { %p2019_p13 = por %p2018_p12, %p2017_p11 }
 0x5da   : > { %p2020_p0 = pnand %p2019_p13, %p2013_p8 }
 0x5dc   : > { %2023 = shalt.err (!%p2020_p0)
}
 0x5dd   : > { %1931 = dma.vmem_to_hbm [thread:$0]  (%p2153_p5), %s2466_s22, 32, %s2464_s26, %s1539_s27  }
 0x5de PF: > { %p1937_p1 = scmp.ge.s32.totalorder %s2058_s14, 2  ;;  %s1565_s25 = sand.u32 1, %s2046_s11  }
 0x5df   : > { %s1566_s28 = scalar_lea.sflag [#allocation4], %s1565_s25 }
 0x5e0   : > { %p1934_p2 = pnand %p1937_p1, %p2157_p6 }
 0x5e2   : > { %2041 = dma.done.wait (!%p1934_p2), %s1566_s28, 32  }
 0x5e3   : > { %2043 = vsyncadd (!%p1934_p2), %s1566_s28, 4294967264  ;;  %p21_p3 = scmp.ge.s32.totalorder %s2141_s16, 6   ;;  %s2525_s11 = smov %s2050_s12 }
 0x5e4   : > { %s2526_s12 = smov %s2054_s13  ;;  %s2527_s13 = smov %s2151_s19 }
 0x5e5   : > { %s2528_s14 = smov %s2141_s16  ;;  %23 = sbr.rel (!%p21_p3) target bundleno = 6 (0x6), region = 91 }
 0x5ec   :  { %1571 = vsyncpa [#allocation4], 1 }
 0x5ed   :  { %1573 = vsyncpa [#allocation4 + $0x1], 1 }

</bundles_post_ra>
